<compile_context>
chip_gen: v5e
topology: v5e:2x2
jax: 0.10.0
libtpu: 0.0.40
codegen_flags: <defaults>
</compile_context>

<pallas_src>
import functools

import jax
import jax.numpy as jnp
from jax.experimental import pallas as pl
from jax.experimental.pallas import tpu as pltpu


def linear_kernel(x_ref, w_ref, b_ref, o_ref):
    # x_ref: (TILE_B, IN) -- native batch-major layout (no wrapper transpose)
    # w_ref: (IN, OUT)    -- tiny, constant across grid steps
    # b_ref: (1, OUT)
    # o_ref: (TILE_B, OUT)
    x = x_ref[...]
    w = w_ref[...]
    in_features = x.shape[1]
    # Unrolled VPU FMAs: acc[t, j] = b[j] + sum_k x[t, k] * w[k, j]  (no MXU).
    acc = b_ref[...] + x[:, 0:1] * w[0:1, :]
    for k in range(1, in_features):
        acc = acc + x[:, k:k + 1] * w[k:k + 1, :]
    o_ref[...] = acc.astype(o_ref.dtype)


# Lane padding of the narrow feature dims (IN=4 / OUT=3 -> 128 lanes in VMEM)
# makes each buffered row cost ~1 KiB of VMEM (in + out, double-buffered), so
# cap tiles at 4096 rows (~8 MiB total) to fit v5e's 16 MiB scoped-VMEM default
# (and v7x's 32 MiB) with headroom.
_MAX_SAFE_TILE_B = 4096
# Below this, a fused XLA GEMM beats the pallas_call fixed overhead.
_MIN_PALLAS_BATCH = 1024


def _choose_tile_b(batch, max_tile_b):
    cap = min(int(max_tile_b), _MAX_SAFE_TILE_B)
    cap = max(8, (cap // 8) * 8)          # defensive (8,128)-constraint rounding
    want = -(-batch // 8)                 # aim for >= ~8 grid steps
    want = max(8, ((want + 7) // 8) * 8)  # round up to a sublane multiple
    return min(cap, want)


@functools.partial(jax.jit, static_argnames=("max_tile_b", "use_pallas"))
def softmax_classifier_forward(x, w, b, *, max_tile_b=_MAX_SAFE_TILE_B,
                               use_pallas=None):
    """logits = x @ W + b  (same semantics as nn.Linear(4, 3).forward).

    x: (B, IN) f32, w: (IN, OUT) f32, b: (OUT,) f32 -> (B, OUT) f32.
    Inputs/outputs stay in their native layouts; no wrapper transposes or pads.
    """
    B, IN = x.shape
    OUT = w.shape[1]

    if use_pallas is None:
        use_pallas = B >= _MIN_PALLAS_BATCH
    if not use_pallas:
        # Small-batch fast path: one fused XLA pass at full f32 precision.
        return jnp.dot(x, w, precision=jax.lax.Precision.HIGHEST) + b

    tile_b = _choose_tile_b(B, max_tile_b)
    grid = (pl.cdiv(B, tile_b),)

    return pl.pallas_call(
        linear_kernel,
        out_shape=jax.ShapeDtypeStruct((B, OUT), x.dtype),
        grid=grid,
        in_specs=[
            pl.BlockSpec((tile_b, IN), lambda i: (i, 0)),  # x tile, native layout
            pl.BlockSpec((IN, OUT), lambda i: (0, 0)),     # weights (replicated)
            pl.BlockSpec((1, OUT), lambda i: (0, 0)),      # bias (replicated)
        ],
        out_specs=pl.BlockSpec((tile_b, OUT), lambda i: (i, 0)),
        compiler_params=pltpu.CompilerParams(
            dimension_semantics=("parallel",)),
        cost_estimate=pl.CostEstimate(
            flops=2 * B * IN * OUT,
            transcendentals=0,
            bytes_accessed=4 * (B * IN + B * OUT + IN * OUT + OUT)),
    )(x, w, b.reshape(1, OUT))


def _reference_logits(x, w, b):
    # Elementwise f32 reference (avoids TPU default-precision matmul rounding).
    return (x[:, :, None] * w[None, :, :]).sum(axis=1) + b


if __name__ == "__main__":
    key = jax.random.PRNGKey(0)
    kx, kw, kb, kx2, kx3 = jax.random.split(key, 5)

    B, IN, OUT = 8, 4, 3
    # Deterministic init mirroring nn.Linear default: U(-1/sqrt(IN), 1/sqrt(IN))
    bound = 1.0 / jnp.sqrt(jnp.float32(IN))
    w = jax.random.uniform(kw, (IN, OUT), jnp.float32, -bound, bound)
    b = jax.random.uniform(kb, (OUT,), jnp.float32, -bound, bound)
    x = jax.random.normal(kx, (B, IN), jnp.float32)
    ref = _reference_logits(x, w, b)

    # 1) Tiny batch, Pallas path forced (single exact block).
    out = jax.block_until_ready(softmax_classifier_forward(x, w, b, use_pallas=True))
    assert out.shape == (B, OUT)
    assert jnp.allclose(out, ref, atol=1e-5, rtol=1e-5)

    # 2) Tiny batch, default path (XLA small-batch fast path) — same semantics.
    out_fp = jax.block_until_ready(softmax_classifier_forward(x, w, b))
    assert jnp.allclose(out_fp, ref, atol=1e-5, rtol=1e-5)

    # 3) Multi-step pipelined grid with a ragged last block (B % tile_b != 0).
    B2 = 1000
    x2 = jax.random.normal(kx2, (B2, IN), jnp.float32)
    out2 = jax.block_until_ready(
        softmax_classifier_forward(x2, w, b, max_tile_b=256, use_pallas=True))
    ref2 = _reference_logits(x2, w, b)
    assert out2.shape == (B2, OUT)
    assert jnp.allclose(out2, ref2, atol=1e-5, rtol=1e-5)

    # 4) Larger batch through the default auto-Pallas path (multi-step grid).
    B3 = 20000
    x3 = jax.random.normal(kx3, (B3, IN), jnp.float32)
    out3 = jax.block_until_ready(softmax_classifier_forward(x3, w, b))
    ref3 = _reference_logits(x3, w, b)
    assert out3.shape == (B3, OUT)
    assert jnp.allclose(out3, ref3, atol=1e-5, rtol=1e-5)

    print("KERNEL_OK")
</pallas_src>

<mosaic_0001>
module attributes {stable_mosaic.version = 11 : i64} {
  func.func @linear_kernel(%arg0: i32, %arg1: memref<8x4xf32, #tpu.memory_space<vmem>>, %arg2: memref<4x3xf32, #tpu.memory_space<vmem>>, %arg3: memref<1x3xf32, #tpu.memory_space<vmem>>, %arg4: memref<8x3xf32, #tpu.memory_space<vmem>>) attributes {dimension_semantics = [#tpu.dimension_semantics<parallel>], iteration_bounds = array<i64: 1>, scalar_prefetch = 0 : i64, scratch_operands = 0 : i64, tpu.core_type = #tpu.core_type<tc>, window_params = [{transform_indices = @transform_0, window_bounds = array<i64: 8, 4>}, {pipeline_mode = #tpu.pipeline_mode<synchronous>, transform_indices = @transform_1, window_bounds = array<i64: 4, 3>}, {pipeline_mode = #tpu.pipeline_mode<synchronous>, transform_indices = @transform_2, window_bounds = array<i64: 1, 3>}, {transform_indices = @transform_3, window_bounds = array<i64: 8, 3>}]} {
    %c0 = arith.constant 0 : index
    %c0_0 = arith.constant 0 : index
    %0 = vector.load %arg1[%c0, %c0_0] : memref<8x4xf32, #tpu.memory_space<vmem>>, vector<8x4xf32>
    %c0_1 = arith.constant 0 : index
    %c0_2 = arith.constant 0 : index
    %1 = vector.load %arg2[%c0_1, %c0_2] : memref<4x3xf32, #tpu.memory_space<vmem>>, vector<4x3xf32>
    %c0_3 = arith.constant 0 : index
    %c0_4 = arith.constant 0 : index
    %2 = vector.load %arg3[%c0_3, %c0_4] : memref<1x3xf32, #tpu.memory_space<vmem>>, vector<1x3xf32>
    %3 = vector.extract_strided_slice %0 {offsets = [0, 0], sizes = [8, 1], strides = [1, 1]} : vector<8x4xf32> to vector<8x1xf32>
    %4 = vector.extract_strided_slice %1 {offsets = [0, 0], sizes = [1, 3], strides = [1, 1]} : vector<4x3xf32> to vector<1x3xf32>
    %5 = vector.broadcast %3 : vector<8x1xf32> to vector<8x3xf32>
    %6 = vector.broadcast %4 : vector<1x3xf32> to vector<8x3xf32>
    %7 = arith.mulf %5, %6 : vector<8x3xf32>
    %8 = vector.broadcast %2 : vector<1x3xf32> to vector<8x3xf32>
    %9 = arith.addf %8, %7 : vector<8x3xf32>
    %10 = vector.extract_strided_slice %0 {offsets = [0, 1], sizes = [8, 1], strides = [1, 1]} : vector<8x4xf32> to vector<8x1xf32>
    %11 = vector.extract_strided_slice %1 {offsets = [1, 0], sizes = [1, 3], strides = [1, 1]} : vector<4x3xf32> to vector<1x3xf32>
    %12 = vector.broadcast %10 : vector<8x1xf32> to vector<8x3xf32>
    %13 = vector.broadcast %11 : vector<1x3xf32> to vector<8x3xf32>
    %14 = arith.mulf %12, %13 : vector<8x3xf32>
    %15 = arith.addf %9, %14 : vector<8x3xf32>
    %16 = vector.extract_strided_slice %0 {offsets = [0, 2], sizes = [8, 1], strides = [1, 1]} : vector<8x4xf32> to vector<8x1xf32>
    %17 = vector.extract_strided_slice %1 {offsets = [2, 0], sizes = [1, 3], strides = [1, 1]} : vector<4x3xf32> to vector<1x3xf32>
    %18 = vector.broadcast %16 : vector<8x1xf32> to vector<8x3xf32>
    %19 = vector.broadcast %17 : vector<1x3xf32> to vector<8x3xf32>
    %20 = arith.mulf %18, %19 : vector<8x3xf32>
    %21 = arith.addf %15, %20 : vector<8x3xf32>
    %22 = vector.extract_strided_slice %0 {offsets = [0, 3], sizes = [8, 1], strides = [1, 1]} : vector<8x4xf32> to vector<8x1xf32>
    %23 = vector.extract_strided_slice %1 {offsets = [3, 0], sizes = [1, 3], strides = [1, 1]} : vector<4x3xf32> to vector<1x3xf32>
    %24 = vector.broadcast %22 : vector<8x1xf32> to vector<8x3xf32>
    %25 = vector.broadcast %23 : vector<1x3xf32> to vector<8x3xf32>
    %26 = arith.mulf %24, %25 : vector<8x3xf32>
    %27 = arith.addf %21, %26 : vector<8x3xf32>
    %c0_5 = arith.constant 0 : index
    %c0_6 = arith.constant 0 : index
    %28 = vector.load %arg4[%c0_5, %c0_6] : memref<8x3xf32, #tpu.memory_space<vmem>>, vector<8x3xf32>
    tpu.vector_store %arg4[%c0_5, %c0_6], %27 {strides = array<i32>} : memref<8x3xf32, #tpu.memory_space<vmem>>, vector<8x3xf32>,
    return
  }
  func.func @transform_0(%arg0: i32) -> (i32, i32) {
    %c0_i32 = arith.constant 0 : i32
    %c0_i32_0 = arith.constant 0 : i32
    return %arg0, %c0_i32 : i32, i32
  }
  func.func @transform_1(%arg0: i32) -> (i32, i32) {
    %c0_i32 = arith.constant 0 : i32
    %c0_i32_0 = arith.constant 0 : i32
    %c0_i32_1 = arith.constant 0 : i32
    return %c0_i32, %c0_i32_0 : i32, i32
  }
  func.func @transform_2(%arg0: i32) -> (i32, i32) {
    %c0_i32 = arith.constant 0 : i32
    %c0_i32_0 = arith.constant 0 : i32
    %c0_i32_1 = arith.constant 0 : i32
    return %c0_i32, %c0_i32_0 : i32, i32
  }
  func.func @transform_3(%arg0: i32) -> (i32, i32) {
    %c0_i32 = arith.constant 0 : i32
    %c0_i32_0 = arith.constant 0 : i32
    return %arg0, %c0_i32 : i32, i32
  }
}

</mosaic_0001>

<bundles_post_ra>
// kernel: softmax_classifier_forward.1
= control target key start
LH: loop header
LB: loop body
LE: loop exit
PB: predicated region body
PF: predicated region fallthrough
CT: control target
= control target key end

     0   :  { %v65_v0 = vmov 0   ;;  %v66_v2 = vmov 2   ;;  %v67_v3 = vmov 1   ;;  %v68_v4 = vmov 3   ;;  %s101_s0 = inlined_call_operand.vmem [shape: f32[8,4], index: 0, kind: input, shape index: {}]   ;;  %s102_s2 = inlined_call_operand.vmem [shape: f32[1,3], index: 2, kind: input, shape index: {}]   ;;  %s103_s1 = inlined_call_operand.vmem [shape: f32[4,3], index: 1, kind: input, shape index: {}]   ;;  %s104_s3 = inlined_call_operand.vmem [shape: f32[8,3], index: 3, kind: output, shape index: {}]  }
   0x1   :  { %59 = vset.pattern.permute.xlu0 %v65_v0  ;;  %v14_v1 = vld [vmem:[%s101_s0] sm:$0xff]  ;;  %61 = vset.pattern.permute.xlu1 %v66_v2  ;;  %vm49_vm0 = vcmask 23552  }
   0x2   :  { %19 = vperm.xlu0 %59, %v14_v1   ;;  %36 = vperm.xlu1 %61, %v14_v1   ;;  %v15_v5 = vld [vmem:[%s103_s1] sm:$0xf] }
   0x3   :  { %v22_v8 = vperm.slane %v15_v5, 0  ;;  %v64_v9 = vld [vmem:[%s102_s2] ss:$0 sm:$0xff]  ;;  %v32_v11 = vperm.slane %v15_v5, 1  ;;  %v39_v12 = vperm.slane %v15_v5, 2  ;;  %v46_v13 = vperm.slane %v15_v5, 3 }
   0xa   :  { %60 = vset.pattern.permute.xlu0 %v67_v3  ;;  %62 = vset.pattern.permute.xlu1 %v68_v4 }
   0xb   :  { %29 = vperm.xlu0 %60, %v14_v1   ;;  %43 = vperm.xlu1 %62, %v14_v1  }
  0x13   :  { %63 = vset.pattern.permute.xlu0 %v68_v4 }
  0x74   :  { %v20_v6 = vpop.permute.xlu0 %19  ;;  %v37_v7 = vpop.permute.xlu1 %36 }
  0x75   :  { %v23_v10 = vmul.f32 %v22_v8, %v20_v6  ;;  %v40_v18 = vmul.f32 %v39_v12, %v37_v7 }
  0x77   :  { %v27_v16 = vadd.f32 %v64_v9, %v23_v10 }
  0x7d   :  { %v30_v14 = vpop.permute.xlu0 %29  ;;  %v44_v15 = vpop.permute.xlu1 %43 }
  0x7e   :  { %v33_v17 = vmul.f32 %v32_v11, %v30_v14  ;;  %v47_v20 = vmul.f32 %v46_v13, %v44_v15 }
  0x80   :  { %v34_v19 = vadd.f32 %v33_v17, %v27_v16 }
  0x82   :  { %v41_v21 = vadd.f32 %v40_v18, %v34_v19 }
  0x84   :  { %v48_v22 = vadd.f32 %v47_v20, %v41_v21 }
  0x86   :  { %50 = vst.msk [vmem:[%s104_s3] sm:$0xff] %vm49_vm0, %v48_v22 }

</bundles_post_ra>
